<compile_context>
chip_gen: v6e
topology: v6e:2x2x1
jax: 0.10.0
libtpu: 0.0.40
codegen_flags: <defaults>
</compile_context>

<pallas_src>
import functools
import math

import jax
import jax.numpy as jnp
import numpy as np
from jax.experimental import pallas as pl
from jax.experimental.pallas import tpu as pltpu

EPS = 1e-5  # nn.LayerNorm default eps
HIGHEST = jax.lax.Precision.HIGHEST
VMEM_LIMIT = 64 * 1024 * 1024   # > 32 MiB scoped default; fits v7x's 64 MiB physical
MAX_ROW_TILE = 512              # row (M) tile for streamed kernels; multiple of 8


def _layernorm(x, gamma, beta):
    mean = jnp.mean(x, axis=-1, keepdims=True)
    var = jnp.mean(jnp.square(x - mean), axis=-1, keepdims=True)
    return (x - mean) * jax.lax.rsqrt(var + EPS) * gamma + beta


def _gelu(x):
    # exact GELU (PyTorch nn.GELU default): 0.5*x*(1+erf(x/sqrt(2)))
    return 0.5 * x * (1.0 + jax.lax.erf(x * (1.0 / math.sqrt(2.0))))


def _bf16(x):
    return x.astype(jnp.bfloat16)


def _row_tile(rows, max_tm=MAX_ROW_TILE):
    # Small arrays: one full-dim block (always legal). Large arrays: fixed
    # multiple-of-8 tile -> double-buffered row streaming; last block may be
    # partial (Pallas masks the writeback).
    return rows if rows <= max_tm else max_tm


# ------------------ Kernel 1: patch embedding (LN -> Linear -> LN), M-tiled ------------------
def _patch_embed_kernel(p_ref, g1_ref, b1_ref, w_ref, bw_ref, g2_ref, b2_ref, o_ref):
    x = _layernorm(p_ref[...], g1_ref[...], b1_ref[...])
    x = jnp.dot(_bf16(x), w_ref[...], preferred_element_type=jnp.float32) + bw_ref[...]
    o_ref[...] = _layernorm(x, g2_ref[...], b2_ref[...])


def patch_embed(patches, p):
    rows, pdim = patches.shape
    dim = p["w"].shape[1]
    tm = _row_tile(rows)
    return pl.pallas_call(
        _patch_embed_kernel,
        out_shape=jax.ShapeDtypeStruct((rows, dim), jnp.float32),
        grid=(pl.cdiv(rows, tm),),
        in_specs=[
            pl.BlockSpec((tm, pdim), lambda i: (i, 0)),
            pl.BlockSpec((1, pdim), lambda i: (0, 0)),
            pl.BlockSpec((1, pdim), lambda i: (0, 0)),
            pl.BlockSpec((pdim, dim), lambda i: (0, 0)),   # constant -> fetched once
            pl.BlockSpec((1, dim), lambda i: (0, 0)),
            pl.BlockSpec((1, dim), lambda i: (0, 0)),
            pl.BlockSpec((1, dim), lambda i: (0, 0)),
        ],
        out_specs=pl.BlockSpec((tm, dim), lambda i: (i, 0)),
        compiler_params=pltpu.CompilerParams(
            dimension_semantics=("parallel",), vmem_limit_bytes=VMEM_LIMIT),
    )(patches, p["ln1_g"], p["ln1_b"], p["w"], p["b"], p["ln2_g"], p["ln2_b"])


# ------------------ Kernel 2: fused LN + QKV + attention + out-proj + residual ------------------
def _attention_kernel(x_ref, g_ref, b_ref, wqkv_ref, wo_ref, bo_ref, o_ref, ho_scratch,
                      *, heads, dim_head, scale):
    inner = heads * dim_head
    x = x_ref[0].astype(jnp.float32)                           # (N, dim) residual input
    xn = _layernorm(x, g_ref[...], b_ref[...])
    # Fused QKV projection: one full-width MXU matmul, weights resident across grid.
    qkv = jnp.dot(_bf16(xn), wqkv_ref[...], preferred_element_type=jnp.float32)  # (N, 3*inner)

    # TODO(synk): for many heads / long N, replace this static unrolled loop with a
    # head-grid axis or flash-style KV tiling (bounded live ranges, lane-dense slabs).
    for h in range(heads):
        q = _bf16(qkv[:, h * dim_head:(h + 1) * dim_head] * scale)     # scale folded into q
        k = _bf16(qkv[:, inner + h * dim_head: inner + (h + 1) * dim_head])
        v = _bf16(qkv[:, 2 * inner + h * dim_head: 2 * inner + (h + 1) * dim_head])

        # q @ k^T contracting head_dim (no materialized transpose).
        s = jax.lax.dot_general(q, k, (((1,), (1,)), ((), ())),
                                preferred_element_type=jnp.float32)     # (N, N)
        s = s - jnp.max(s, axis=-1, keepdims=True)
        e = jnp.exp(s)
        p = e * pl.reciprocal(jnp.sum(e, axis=-1, keepdims=True), approx=True)

        ho = jnp.dot(_bf16(p), v, preferred_element_type=jnp.float32)   # (N, dh)
        # Store each head's output at its lane offset; no per-head out-proj.
        ho_scratch[:, h * dim_head:(h + 1) * dim_head] = _bf16(ho)

    # ONE full-depth out-projection over all heads.
    out = jnp.dot(ho_scratch[...], wo_ref[...],
                  preferred_element_type=jnp.float32) + bo_ref[...] + x
    o_ref[0] = out.astype(o_ref.dtype)


def attention_block(x3, lp, *, heads, dim_head):
    B, N, D = x3.shape
    inner = heads * dim_head
    kern = functools.partial(_attention_kernel, heads=heads, dim_head=dim_head,
                             scale=dim_head ** -0.5)
    return pl.pallas_call(
        kern,
        out_shape=jax.ShapeDtypeStruct((B, N, D), jnp.bfloat16),
        grid=(B,),
        in_specs=[
            pl.BlockSpec((1, N, D), lambda b: (b, 0, 0)),
            pl.BlockSpec((1, D), lambda b: (0, 0)),
            pl.BlockSpec((1, D), lambda b: (0, 0)),
            # constant index maps -> weights are not re-fetched across grid steps
            pl.BlockSpec((D, 3 * inner), lambda b: (0, 0)),
            pl.BlockSpec((inner, D), lambda b: (0, 0)),
            pl.BlockSpec((1, D), lambda b: (0, 0)),
        ],
        out_specs=pl.BlockSpec((1, N, D), lambda b: (b, 0, 0)),
        scratch_shapes=[pltpu.VMEM((N, inner), jnp.bfloat16)],   # per-head outputs
        compiler_params=pltpu.CompilerParams(
            dimension_semantics=("parallel",), vmem_limit_bytes=VMEM_LIMIT),
    )(x3, lp["attn_ln_g"], lp["attn_ln_b"], lp["w_qkv"], lp["w_out"], lp["b_out"])


# ------------------ Kernel 3: FFN (LN -> Linear -> GELU -> Linear) + residual, M-tiled ----------
def _ffn_kernel(x_ref, g_ref, b_ref, w1_ref, b1_ref, w2_ref, b2_ref, o_ref):
    x = x_ref[...].astype(jnp.float32)
    xn = _layernorm(x, g_ref[...], b_ref[...])
    h1 = jnp.dot(_bf16(xn), w1_ref[...], preferred_element_type=jnp.float32) + b1_ref[...]
    h1 = _gelu(h1)
    h2 = jnp.dot(_bf16(h1), w2_ref[...], preferred_element_type=jnp.float32) + b2_ref[...]
    o_ref[...] = (h2 + x).astype(o_ref.dtype)


def ffn_block(x2d, lp):
    rows, dim = x2d.shape
    mlp = lp["w1"].shape[1]
    tm = _row_tile(rows)
    return pl.pallas_call(
        _ffn_kernel,
        out_shape=jax.ShapeDtypeStruct((rows, dim), jnp.bfloat16),
        grid=(pl.cdiv(rows, tm),),
        in_specs=[
            pl.BlockSpec((tm, dim), lambda i: (i, 0)),
            pl.BlockSpec((1, dim), lambda i: (0, 0)),
            pl.BlockSpec((1, dim), lambda i: (0, 0)),
            pl.BlockSpec((dim, mlp), lambda i: (0, 0)),
            pl.BlockSpec((1, mlp), lambda i: (0, 0)),
            pl.BlockSpec((mlp, dim), lambda i: (0, 0)),
            pl.BlockSpec((1, dim), lambda i: (0, 0)),
        ],
        out_specs=pl.BlockSpec((tm, dim), lambda i: (i, 0)),
        compiler_params=pltpu.CompilerParams(
            dimension_semantics=("parallel",), vmem_limit_bytes=VMEM_LIMIT),
    )(x2d, lp["ff_ln_g"], lp["ff_ln_b"], lp["w1"], lp["b1"], lp["w2"], lp["b2"])


# ------------------ Kernel 4: final norm (cls token) + classification head, M-tiled -------------
def _head_kernel(x_ref, g_ref, b_ref, w_ref, bh_ref, o_ref):
    x = _layernorm(x_ref[...].astype(jnp.float32), g_ref[...], b_ref[...])
    o_ref[...] = jnp.dot(_bf16(x), w_ref[...], preferred_element_type=jnp.float32) + bh_ref[...]


def mlp_head(x_cls, p):
    rows, dim = x_cls.shape
    nc = p["w"].shape[1]
    tm = _row_tile(rows)
    return pl.pallas_call(
        _head_kernel,
        out_shape=jax.ShapeDtypeStruct((rows, nc), jnp.float32),
        grid=(pl.cdiv(rows, tm),),
        in_specs=[
            pl.BlockSpec((tm, dim), lambda i: (i, 0)),
            pl.BlockSpec((1, dim), lambda i: (0, 0)),
            pl.BlockSpec((1, dim), lambda i: (0, 0)),
            pl.BlockSpec((dim, nc), lambda i: (0, 0)),
            pl.BlockSpec((1, nc), lambda i: (0, 0)),
        ],
        out_specs=pl.BlockSpec((tm, nc), lambda i: (i, 0)),
        compiler_params=pltpu.CompilerParams(
            dimension_semantics=("parallel",), vmem_limit_bytes=VMEM_LIMIT),
    )(x_cls, p["ln_g"], p["ln_b"], p["w"], p["b"])


# ------------------ full ViT forward (glue + kernels) ------------------
def vit_forward(img, params, *, patch_size, heads, dim_head):
    B, C, H, W = img.shape
    ph = pw = patch_size
    h, w = H // ph, W // pw
    n = h * w
    patch_dim = ph * pw * C
    dim = params["patch"]["w"].shape[1]

    # Rearrange 'b c (h p1) (w p2) -> b (h w) (p1 p2 c)'  (layout-only glue)
    x = img.reshape(B, C, h, ph, w, pw).transpose(0, 2, 4, 3, 5, 1).reshape(B * n, patch_dim)

    # patch embedding kernel over all B*n patch rows (M-tiled)
    x = patch_embed(x, params["patch"]).reshape(B, n, dim)                 # f32

    # cls token + positional embedding (trivial elementwise glue)
    cls = jnp.broadcast_to(params["cls_token"], (B, 1, dim))
    x = jnp.concatenate([cls, x], axis=1) + params["pos_embedding"][:, : n + 1]
    N = n + 1

    # bf16 residual stream between transformer kernels (stats/accumulation stay f32)
    x = x.astype(jnp.bfloat16)
    for lp in params["layers"]:
        x = attention_block(x, lp, heads=heads, dim_head=dim_head)         # (B, N, dim) bf16
        x = ffn_block(x.reshape(B * N, dim), lp).reshape(B, N, dim)        # (B, N, dim) bf16
    # TODO(synk): P10 cross-pallas_call semaphore/VMEM futures to prefetch layer l+1
    # weights behind layer l's compute (latency win when B*N is small).

    # pool='cls': the final transformer LayerNorm is per-token, so applying it to
    # the cls row only (inside the head kernel) is exactly equivalent.
    x_cls = x[:, 0]                                                        # (B, dim) bf16
    return mlp_head(x_cls, params["head"])


# ------------------ deterministic parameter init ------------------
def init_params(key, *, channels, patch_size, dim, depth, heads, dim_head, mlp_dim,
                num_patches, num_classes):
    patch_dim = channels * patch_size * patch_size
    inner = heads * dim_head
    keys = iter(jax.random.split(key, 8 + depth * 4))

    def wgt(k, shape, scale=0.02):
        # MXU-feeding weights stored in bf16 (halves HBM/VMEM traffic; MXU peak is bf16).
        return (scale * jax.random.normal(k, shape, jnp.float32)).astype(jnp.bfloat16)

    ones = lambda s: jnp.ones(s, jnp.float32)
    zeros = lambda s: jnp.zeros(s, jnp.float32)

    params = {
        "patch": {
            "ln1_g": ones((1, patch_dim)), "ln1_b": zeros((1, patch_dim)),
            "w": wgt(next(keys), (patch_dim, dim)), "b": zeros((1, dim)),
            "ln2_g": ones((1, dim)), "ln2_b": zeros((1, dim)),
        },
        "pos_embedding": jax.random.normal(next(keys), (1, num_patches + 1, dim), jnp.float32),
        "cls_token": jax.random.normal(next(keys), (1, 1, dim), jnp.float32),
        "layers": [],
        "head": {
            "ln_g": ones((1, dim)), "ln_b": zeros((1, dim)),
            "w": wgt(next(keys), (dim, num_classes)), "b": zeros((1, num_classes)),
        },
    }
    for _ in range(depth):
        params["layers"].append({
            "attn_ln_g": ones((1, dim)), "attn_ln_b": zeros((1, dim)),
            "w_qkv": wgt(next(keys), (dim, 3 * inner)),
            "w_out": wgt(next(keys), (inner, dim)), "b_out": zeros((1, dim)),
            "ff_ln_g": ones((1, dim)), "ff_ln_b": zeros((1, dim)),
            "w1": wgt(next(keys), (dim, mlp_dim)), "b1": zeros((1, mlp_dim)),
            "w2": wgt(next(keys), (mlp_dim, dim)), "b2": zeros((1, dim)),
        })
    return params


# ------------------ pure-JAX reference (same math, f32 HIGHEST precision) ------------------
def vit_reference(img, params, *, patch_size, heads, dim_head):
    f32 = lambda t: t.astype(jnp.float32)
    B, C, H, W = img.shape
    ph = pw = patch_size
    h, w = H // ph, W // pw
    n = h * w
    x = img.reshape(B, C, h, ph, w, pw).transpose(0, 2, 4, 3, 5, 1).reshape(B, n, ph * pw * C)

    pp = params["patch"]
    x = _layernorm(x, pp["ln1_g"], pp["ln1_b"])
    x = jnp.einsum("bnp,pd->bnd", x, f32(pp["w"]), precision=HIGHEST) + pp["b"]
    x = _layernorm(x, pp["ln2_g"], pp["ln2_b"])

    dim = x.shape[-1]
    inner = heads * dim_head
    scale = dim_head ** -0.5
    cls = jnp.broadcast_to(params["cls_token"], (B, 1, dim))
    x = jnp.concatenate([cls, x], axis=1) + params["pos_embedding"][:, : n + 1]

    for lp in params["layers"]:
        xn = _layernorm(x, lp["attn_ln_g"], lp["attn_ln_b"])
        qkv = jnp.einsum("bnd,de->bne", xn, f32(lp["w_qkv"]), precision=HIGHEST)
        q, k, v = jnp.split(qkv, 3, axis=-1)
        to_h = lambda t: t.reshape(B, -1, heads, dim_head).transpose(0, 2, 1, 3)
        q, k, v = to_h(q), to_h(k), to_h(v)
        dots = jnp.einsum("bhnd,bhmd->bhnm", q, k, precision=HIGHEST) * scale
        attn = jax.nn.softmax(dots, axis=-1)
        out = jnp.einsum("bhnm,bhmd->bhnd", attn, v, precision=HIGHEST)
        out = out.transpose(0, 2, 1, 3).reshape(B, -1, inner)
        out = jnp.einsum("bnd,de->bne", out, f32(lp["w_out"]), precision=HIGHEST) + lp["b_out"]
        x = out + x
        xn = _layernorm(x, lp["ff_ln_g"], lp["ff_ln_b"])
        h1 = _gelu(jnp.einsum("bnd,de->bne", xn, f32(lp["w1"]), precision=HIGHEST) + lp["b1"])
        x = jnp.einsum("bnd,de->bne", h1, f32(lp["w2"]), precision=HIGHEST) + lp["b2"] + x

    hp = params["head"]
    x = _layernorm(x, hp["ln_g"], hp["ln_b"])
    return jnp.einsum("bd,dc->bc", x[:, 0], f32(hp["w"]), precision=HIGHEST) + hp["b"]


if __name__ == "__main__":
    key = jax.random.PRNGKey(0)
    k_img, k_params = jax.random.split(key)

    # small ViT config: image 16x16, patch 4 -> 16 patches (+1 cls).
    # dim / inner / 3*inner / mlp_dim chosen as multiples of 128 -> lane-dense outputs.
    B, C, IMG, PS = 2, 3, 16, 4
    DIM, DEPTH, HEADS, DH, MLP, NC = 128, 2, 4, 32, 256, 10
    NUM_PATCHES = (IMG // PS) ** 2

    img = jax.random.normal(k_img, (B, C, IMG, IMG), jnp.float32)
    params = init_params(
        k_params, channels=C, patch_size=PS, dim=DIM, depth=DEPTH, heads=HEADS,
        dim_head=DH, mlp_dim=MLP, num_patches=NUM_PATCHES, num_classes=NC,
    )

    out = vit_forward(img, params, patch_size=PS, heads=HEADS, dim_head=DH)
    out = jax.block_until_ready(out)

    assert out.shape == (B, NC)
    assert bool(jnp.all(jnp.isfinite(out)))

    ref = vit_reference(img, params, patch_size=PS, heads=HEADS, dim_head=DH)
    np.testing.assert_allclose(np.asarray(out), np.asarray(ref), rtol=5e-2, atol=5e-2)

    print("KERNEL_OK")
</pallas_src>

<mosaic_0001>
module attributes {stable_mosaic.version = 11 : i64} {
  func.func @_patch_embed_kernel(%arg0: i32, %arg1: memref<32x48xf32, #tpu.memory_space<vmem>>, %arg2: memref<1x48xf32, #tpu.memory_space<vmem>>, %arg3: memref<1x48xf32, #tpu.memory_space<vmem>>, %arg4: memref<48x128xbf16, #tpu.memory_space<vmem>>, %arg5: memref<1x128xf32, #tpu.memory_space<vmem>>, %arg6: memref<1x128xf32, #tpu.memory_space<vmem>>, %arg7: memref<1x128xf32, #tpu.memory_space<vmem>>, %arg8: memref<32x128xf32, #tpu.memory_space<vmem>>) attributes {dimension_semantics = [#tpu.dimension_semantics<parallel>], iteration_bounds = array<i64: 1>, scalar_prefetch = 0 : i64, scratch_operands = 0 : i64, tpu.core_type = #tpu.core_type<tc>, window_params = [{transform_indices = @transform_0, window_bounds = array<i64: 32, 48>}, {pipeline_mode = #tpu.pipeline_mode<synchronous>, transform_indices = @transform_1, window_bounds = array<i64: 1, 48>}, {pipeline_mode = #tpu.pipeline_mode<synchronous>, transform_indices = @transform_2, window_bounds = array<i64: 1, 48>}, {pipeline_mode = #tpu.pipeline_mode<synchronous>, transform_indices = @transform_3, window_bounds = array<i64: 48, 128>}, {pipeline_mode = #tpu.pipeline_mode<synchronous>, transform_indices = @transform_4, window_bounds = array<i64: 1, 128>}, {pipeline_mode = #tpu.pipeline_mode<synchronous>, transform_indices = @transform_5, window_bounds = array<i64: 1, 128>}, {pipeline_mode = #tpu.pipeline_mode<synchronous>, transform_indices = @transform_6, window_bounds = array<i64: 1, 128>}, {transform_indices = @transform_7, window_bounds = array<i64: 32, 128>}]} {
    %c0 = arith.constant 0 : index
    %c0_0 = arith.constant 0 : index
    %0 = vector.load %arg1[%c0, %c0_0] : memref<32x48xf32, #tpu.memory_space<vmem>>, vector<32x48xf32>
    %c0_1 = arith.constant 0 : index
    %c0_2 = arith.constant 0 : index
    %1 = vector.load %arg2[%c0_1, %c0_2] : memref<1x48xf32, #tpu.memory_space<vmem>>, vector<1x48xf32>
    %c0_3 = arith.constant 0 : index
    %c0_4 = arith.constant 0 : index
    %2 = vector.load %arg3[%c0_3, %c0_4] : memref<1x48xf32, #tpu.memory_space<vmem>>, vector<1x48xf32>
    %cst = arith.constant dense<0.000000e+00> : vector<32xf32>
    %3 = vector.multi_reduction <add>, %0, %cst [1] : vector<32x48xf32> to vector<32xf32>
    %4 = vector.shape_cast %3 : vector<32xf32> to vector<32x1xf32>
    %cst_5 = arith.constant 4.800000e+01 : f32
    %5 = vector.broadcast %cst_5 : f32 to vector<32x1xf32>
    %6 = arith.divf %4, %5 : vector<32x1xf32>
    %7 = vector.broadcast %6 : vector<32x1xf32> to vector<32x48xf32>
    %8 = arith.subf %0, %7 : vector<32x48xf32>
    %9 = arith.mulf %8, %8 : vector<32x48xf32>
    %cst_6 = arith.constant dense<0.000000e+00> : vector<32xf32>
    %10 = vector.multi_reduction <add>, %9, %cst_6 [1] : vector<32x48xf32> to vector<32xf32>
    %11 = vector.shape_cast %10 : vector<32xf32> to vector<32x1xf32>
    %cst_7 = arith.constant 4.800000e+01 : f32
    %12 = vector.broadcast %cst_7 : f32 to vector<32x1xf32>
    %13 = arith.divf %11, %12 : vector<32x1xf32>
    %14 = vector.broadcast %6 : vector<32x1xf32> to vector<32x48xf32>
    %15 = arith.subf %0, %14 : vector<32x48xf32>
    %cst_8 = arith.constant 9.99999974E-6 : f32
    %16 = vector.broadcast %cst_8 : f32 to vector<32x1xf32>
    %17 = arith.addf %13, %16 : vector<32x1xf32>
    %18 = math.rsqrt %17 : vector<32x1xf32>
    %19 = vector.broadcast %18 : vector<32x1xf32> to vector<32x48xf32>
    %20 = arith.mulf %15, %19 : vector<32x48xf32>
    %21 = vector.broadcast %1 : vector<1x48xf32> to vector<32x48xf32>
    %22 = arith.mulf %20, %21 : vector<32x48xf32>
    %23 = vector.broadcast %2 : vector<1x48xf32> to vector<32x48xf32>
    %24 = arith.addf %22, %23 : vector<32x48xf32>
    %25 = arith.truncf %24 : vector<32x48xf32> to vector<32x48xbf16>
    %c0_9 = arith.constant 0 : index
    %c0_10 = arith.constant 0 : index
    %26 = vector.load %arg4[%c0_9, %c0_10] : memref<48x128xbf16, #tpu.memory_space<vmem>>, vector<48x128xbf16>
    %cst_11 = arith.constant dense<0.000000e+00> : vector<32x128xf32>
    %27 = tpu.matmul %25, %26, %cst_11 {dimension_numbers = #tpu.dot_dimension_numbers<[1], [0], [0], [1], [0, 0, 1, 1], [], []>} : vector<32x48xbf16>, vector<48x128xbf16>, vector<32x128xf32> -> vector<32x128xf32>
    %c0_12 = arith.constant 0 : index
    %c0_13 = arith.constant 0 : index
    %28 = vector.load %arg5[%c0_12, %c0_13] : memref<1x128xf32, #tpu.memory_space<vmem>>, vector<1x128xf32>
    %29 = vector.broadcast %28 : vector<1x128xf32> to vector<32x128xf32>
    %30 = arith.addf %27, %29 : vector<32x128xf32>
    %c0_14 = arith.constant 0 : index
    %c0_15 = arith.constant 0 : index
    %31 = vector.load %arg6[%c0_14, %c0_15] : memref<1x128xf32, #tpu.memory_space<vmem>>, vector<1x128xf32>
    %c0_16 = arith.constant 0 : index
    %c0_17 = arith.constant 0 : index
    %32 = vector.load %arg7[%c0_16, %c0_17] : memref<1x128xf32, #tpu.memory_space<vmem>>, vector<1x128xf32>
    %cst_18 = arith.constant dense<0.000000e+00> : vector<32xf32>
    %33 = vector.multi_reduction <add>, %30, %cst_18 [1] : vector<32x128xf32> to vector<32xf32>
    %34 = vector.shape_cast %33 : vector<32xf32> to vector<32x1xf32>
    %cst_19 = arith.constant 1.280000e+02 : f32
    %35 = vector.broadcast %cst_19 : f32 to vector<32x1xf32>
    %36 = arith.divf %34, %35 : vector<32x1xf32>
    %37 = vector.broadcast %36 : vector<32x1xf32> to vector<32x128xf32>
    %38 = arith.subf %30, %37 : vector<32x128xf32>
    %39 = arith.mulf %38, %38 : vector<32x128xf32>
    %cst_20 = arith.constant dense<0.000000e+00> : vector<32xf32>
    %40 = vector.multi_reduction <add>, %39, %cst_20 [1] : vector<32x128xf32> to vector<32xf32>
    %41 = vector.shape_cast %40 : vector<32xf32> to vector<32x1xf32>
    %cst_21 = arith.constant 1.280000e+02 : f32
    %42 = vector.broadcast %cst_21 : f32 to vector<32x1xf32>
    %43 = arith.divf %41, %42 : vector<32x1xf32>
    %44 = vector.broadcast %36 : vector<32x1xf32> to vector<32x128xf32>
    %45 = arith.subf %30, %44 : vector<32x128xf32>
    %cst_22 = arith.constant 9.99999974E-6 : f32
    %46 = vector.broadcast %cst_22 : f32 to vector<32x1xf32>
    %47 = arith.addf %43, %46 : vector<32x1xf32>
    %48 = math.rsqrt %47 : vector<32x1xf32>
    %49 = vector.broadcast %48 : vector<32x1xf32> to vector<32x128xf32>
    %50 = arith.mulf %45, %49 : vector<32x128xf32>
    %51 = vector.broadcast %31 : vector<1x128xf32> to vector<32x128xf32>
    %52 = arith.mulf %50, %51 : vector<32x128xf32>
    %53 = vector.broadcast %32 : vector<1x128xf32> to vector<32x128xf32>
    %54 = arith.addf %52, %53 : vector<32x128xf32>
    %c0_23 = arith.constant 0 : index
    %c0_24 = arith.constant 0 : index
    %55 = vector.load %arg8[%c0_23, %c0_24] : memref<32x128xf32, #tpu.memory_space<vmem>>, vector<32x128xf32>
    tpu.vector_store %arg8[%c0_23, %c0_24], %54 {strides = array<i32>} : memref<32x128xf32, #tpu.memory_space<vmem>>, vector<32x128xf32>,
    return
  }
  func.func @transform_0(%arg0: i32) -> (i32, i32) {
    %c0_i32 = arith.constant 0 : i32
    %c0_i32_0 = arith.constant 0 : i32
    return %arg0, %c0_i32 : i32, i32
  }
  func.func @transform_1(%arg0: i32) -> (i32, i32) {
    %c0_i32 = arith.constant 0 : i32
    %c0_i32_0 = arith.constant 0 : i32
    %c0_i32_1 = arith.constant 0 : i32
    return %c0_i32, %c0_i32_0 : i32, i32
  }
  func.func @transform_2(%arg0: i32) -> (i32, i32) {
    %c0_i32 = arith.constant 0 : i32
    %c0_i32_0 = arith.constant 0 : i32
    %c0_i32_1 = arith.constant 0 : i32
    return %c0_i32, %c0_i32_0 : i32, i32
  }
  func.func @transform_3(%arg0: i32) -> (i32, i32) {
    %c0_i32 = arith.constant 0 : i32
    %c0_i32_0 = arith.constant 0 : i32
    %c0_i32_1 = arith.constant 0 : i32
    return %c0_i32, %c0_i32_0 : i32, i32
  }
  func.func @transform_4(%arg0: i32) -> (i32, i32) {
    %c0_i32 = arith.constant 0 : i32
    %c0_i32_0 = arith.constant 0 : i32
    %c0_i32_1 = arith.constant 0 : i32
    return %c0_i32, %c0_i32_0 : i32, i32
  }
  func.func @transform_5(%arg0: i32) -> (i32, i32) {
    %c0_i32 = arith.constant 0 : i32
    %c0_i32_0 = arith.constant 0 : i32
    %c0_i32_1 = arith.constant 0 : i32
    return %c0_i32, %c0_i32_0 : i32, i32
  }
  func.func @transform_6(%arg0: i32) -> (i32, i32) {
    %c0_i32 = arith.constant 0 : i32
    %c0_i32_0 = arith.constant 0 : i32
    %c0_i32_1 = arith.constant 0 : i32
    return %c0_i32, %c0_i32_0 : i32, i32
  }
  func.func @transform_7(%arg0: i32) -> (i32, i32) {
    %c0_i32 = arith.constant 0 : i32
    %c0_i32_0 = arith.constant 0 : i32
    return %arg0, %c0_i32 : i32, i32
  }
}

</mosaic_0001>

<bundles_post_ra>
// kernel: tpu_custom_call.1
= control target key start
LH: loop header
LB: loop body
LE: loop exit
PB: predicated region body
PF: predicated region fallthrough
CT: control target
= control target key end

     0   :  { %12 = vsyncpa [#allocation3], 0  ;;  %s517_s0 = inlined_call_operand.hbm [shape: f32[32,48], index: 0, kind: input, shape index: {}]   ;;  %s518_s1 = inlined_call_operand.vmem [shape: f32[1,48], index: 1, kind: input, shape index: {}]   ;;  %s519_s2 = inlined_call_operand.vmem [shape: f32[1,48], index: 2, kind: input, shape index: {}]   ;;  %s520_s3 = inlined_call_operand.hbm [shape: bf16[48,128], index: 3, kind: input, shape index: {}]   ;;  %s521_s4 = inlined_call_operand.vmem [shape: f32[1,128], index: 4, kind: input, shape index: {}]   ;;  %s522_s5 = inlined_call_operand.vmem [shape: f32[1,128], index: 5, kind: input, shape index: {}]   ;;  %s523_s6 = inlined_call_operand.vmem [shape: f32[1,128], index: 6, kind: input, shape index: {}]   ;;  %s524_s7 = inlined_call_operand.hbm [shape: f32[32,128], index: 7, kind: output, shape index: {}]  }
   0x1   :  { %13 = vsyncpa [#allocation6], 0 }
   0x2   :  { %14 = vsyncpa [#allocation4], 0  ;;  %s430_s24 = smov [#allocation2]  }
   0x3   :  { %s20_s25 = sshll.u32 %s430_s24, 4  ;;  %s21_s25 = int_to_ptr.vmem [resolvable:$true] %s20_s25 }
   0x4   :  { %s372_s26 = scalar_lea.vmem %s21_s25, 512  ;;  %p377_p1 = scmp.lt.s32.totalorder %s21_s25, %s21_s25 }
   0x5   :  { %p373_p0 = scmp.ne.s32.totalorder %s21_s25, %s372_s26  ;;  %p378_p2 = scmp.lt.s32.totalorder %s372_s26, %s372_s26 }
   0x7   :  { %p379_p3 = por %p378_p2, %p377_p1 }
   0x9   :  { %p380_p4 = pnand %p379_p3, %p373_p0 }
   0xb   :  { %383 = shalt.err (!%p380_p4)
}
   0xc   :  { %s431_s27 = smov 128   ;;  %s432_s28 = smov 8  }
   0xd   :  { %26 = dma.hbm_to_vmem [thread:$0]  %s517_s0, 512, %s21_s25, [#allocation3], %s431_s27, %s431_s27, %s432_s28  }
   0xe   :  { %s433_s8 = smov [#allocation5]  }
   0xf   :  { %s36_s9 = sshll.u32 %s433_s8, 4  ;;  %s37_s9 = int_to_ptr.vmem [resolvable:$true] %s36_s9 }
  0x10   :  { %s392_s10 = scalar_lea.vmem %s37_s9, 384  ;;  %p397_p6 = scmp.lt.s32.totalorder %s37_s9, %s37_s9 }
  0x11   :  { %p393_p5 = scmp.ne.s32.totalorder %s37_s9, %s392_s10  ;;  %p398_p7 = scmp.lt.s32.totalorder %s392_s10, %s392_s10 }
  0x13   :  { %p399_p8 = por %p398_p7, %p397_p6 }
  0x15   :  { %p400_p9 = pnand %p399_p8, %p393_p5 }
  0x17   :  { %403 = shalt.err (!%p400_p9)
}
  0x18   :  { %s434_s11 = smov 64   ;;  %s435_s12 = smov 4  }
  0x19   :  { %42 = dma.hbm_to_vmem [thread:$0]  %s520_s3, 384, %s37_s9, [#allocation6], %s434_s11, %s434_s11, %s435_s12  }
  0x1a   :  { %424 = dma.done.wait [#allocation3], 512  }
  0x1b   :  { %425 = vsyncadd [#allocation3], 4294966784 }
  0x1c   :  { %426 = dma.done.wait [#allocation6], 384  }
  0x1d   :  { %427 = vsyncadd [#allocation6], 4294966912  ;;  %vm62_vm0 = vcmask 392192   ;;  %v56_v0 = vld [vmem:[#allocation2] sm:$0xff]  ;;  %v58_v1 = vld [vmem:[#allocation2 + $0x10] sm:$0xff]  ;;  %s436_s20 = smov [#allocation7]  }
  0x1e   :  { %v57_v2 = vld [vmem:[#allocation2 + $0x8] sm:$0xff]  ;;  %v63_v3 = vsel %vm62_vm0, %v56_v0, 0.0  ;;  %v69_v4 = vsel %vm62_vm0, %v58_v1, 0.0  ;;  %v59_v5 = vld [vmem:[#allocation2 + $0x18] sm:$0xff]  ;;  %v345_v28 = vld [vmem:[#allocation5 + $0x10] sm:$0xff]  }
  0x1f   :  { %64 = vadd.xlane.f32.xlu0 %v63_v3  ;;  %70 = vadd.xlane.f32.xlu1 %v69_v4  ;;  %v66_v6 = vsel %vm62_vm0, %v57_v2, 0.0  ;;  %v72_v7 = vsel %vm62_vm0, %v59_v5, 0.0  ;;  %v346_v29 = vld [vmem:[#allocation5 + $0x8] sm:$0xff]   ;;  %v347_v30 = vld [vmem:[#allocation5] sm:$0xff]  }
  0x20   :  { %328 = vmatprep.subr.bf16.mxu0 %v345_v28  ;;  %v313_v45 = vld [vmem:[%s518_s1] ss:$0 sm:$0xff] }
  0x21   :  { %329 = vmatpush3.bf16.msra.mxu0 %v345_v28  ;;  %v314_v50 = vld [vmem:[%s519_s2] ss:$0 sm:$0xff] }
  0x22   :  { %330 = vmatprep.subr.bf16.mxu0 %v346_v29 }
  0x23   :  { %67 = vadd.xlane.f32.xlu0 %v66_v6  ;;  %73 = vadd.xlane.f32.xlu1 %v72_v7 }
  0x25   :  { %331 = vmatpush3.bf16.msra.mxu0 %v346_v29 }
  0x26   :  { %332 = vmatprep.subr.bf16.mxu0 %v347_v30 }
  0x29   :  { %333 = vmatpush3.bf16.msra.mxu0 %v347_v30 }
  0xa8   :  { %v65_v8 = vpop.xlane.xlu0 %64  ;;  %v71_v9 = vpop.xlane.xlu1 %70 }
  0xa9   :  { %v76_v10 = vmul.f32 0.020833334, %v65_v8  ;;  %v78_v11 = vmul.f32 0.020833334, %v71_v9 }
  0xab   :  { %v80_v12 = vsub.f32 %v56_v0, %v76_v10  ;;  %v82_v13 = vsub.f32 %v58_v1, %v78_v11  ;;  %v315_v0 = vld [vmem:[%s521_s4] ss:$0 sm:$0xff] }
  0xac   :  { %v68_v14 = vpop.xlane.xlu0 %67  ;;  %v74_v15 = vpop.xlane.xlu1 %73 }
  0xad   :  { %v77_v16 = vmul.f32 0.020833334, %v68_v14  ;;  %v79_v17 = vmul.f32 0.020833334, %v74_v15  ;;  %v84_v18 = vmul.f32 %v80_v12, %v80_v12  ;;  %v86_v19 = vmul.f32 %v82_v13, %v82_v13 }
  0xaf   :  { %v81_v20 = vsub.f32 %v57_v2, %v77_v16  ;;  %v83_v21 = vsub.f32 %v59_v5, %v79_v17  ;;  %v88_v22 = vsel %vm62_vm0, %v84_v18, 0.0  ;;  %v94_v23 = vsel %vm62_vm0, %v86_v19, 0.0 }
  0xb0   :  { %89 = vadd.xlane.f32.xlu0 %v88_v22 }
  0xb1   :  { %v85_v24 = vmul.f32 %v81_v20, %v81_v20  ;;  %v87_v25 = vmul.f32 %v83_v21, %v83_v21 }
  0xb3   :  { %v91_v26 = vsel %vm62_vm0, %v85_v24, 0.0  ;;  %v97_v27 = vsel %vm62_vm0, %v87_v25, 0.0 }
  0xb4   :  { %95 = vadd.xlane.f32.xlu0 %v94_v23  ;;  %92 = vadd.xlane.f32.xlu1 %v91_v26 }
  0xb8   :  { %98 = vadd.xlane.f32.xlu1 %v97_v27 }
 0x139   :  { %v90_v31 = vpop.xlane.xlu0 %89 }
 0x13a   :  { %v100_v32 = vmul.f32 0.020833334, %v90_v31 }
 0x13c   :  { %v104_v33 = vadd.f32 1e-05, %v100_v32 }
 0x13d   :  { %v93_v34 = vpop.xlane.xlu1 %92  ;;  %v96_v35 = vpop.xlane.xlu0 %95 }
 0x13e   :  { %348 = vrsqrt.f32 %v104_v33  ;;  %v101_v36 = vmul.f32 0.020833334, %v93_v34  ;;  %v102_v37 = vmul.f32 0.020833334, %v96_v35 }
 0x140   :  { %v105_v38 = vadd.f32 1e-05, %v101_v36  ;;  %v106_v39 = vadd.f32 1e-05, %v102_v37  ;;  %v321_v37 = vld [vmem:[%s522_s5] ss:$0 sm:$0xff] }
 0x141   :  { %v99_v40 = vpop.xlane.xlu1 %98  ;;  %s300_s5 = sshll.u32 %s436_s20, 4  ;;  %s301_s5 = int_to_ptr.vmem [resolvable:$true] %s300_s5 }
 0x142   :  { %350 = vrsqrt.f32 %v105_v38  ;;  %v103_v41 = vmul.f32 0.020833334, %v99_v40  ;;  %p409_p11 = scmp.lt.s32.totalorder %s301_s5, %s301_s5 }
 0x143   :  { %352 = vrsqrt.f32 %v106_v39  ;;  %v322_v39 = vld [vmem:[%s523_s6] ss:$0 sm:$0xff]  ;;  %s404_s6 = scalar_lea.vmem %s301_s5, 512 }
 0x144   :  { %v107_v42 = vadd.f32 1e-05, %v103_v41  ;;  %p405_p10 = scmp.ne.s32.totalorder %s301_s5, %s404_s6  ;;  %p410_p12 = scmp.lt.s32.totalorder %s404_s6, %s404_s6 }
 0x146   :  { %354 = vrsqrt.f32 %v107_v42  ;;  %p411_p13 = por %p410_p12, %p409_p11 }
 0x148   :  { %p412_p0 = pnand %p411_p13, %p405_p10 }
 0x14b   :  { %v349_v43 = vpop.eup %348 }
 0x14c   :  { %v112_v44 = vmul.f32 %v349_v43, %v80_v12 }
 0x14e   :  { %v122_v49 = vmul.f32 %v313_v45, %v112_v44 }
 0x14f   :  { %v351_v46 = vpop.eup %350 }
 0x150   :  { %v353_v47 = vpop.eup %352  ;;  %v113_v48 = vmul.f32 %v351_v46, %v81_v20  ;;  %v132_v54 = vadd.f32 %v314_v50, %v122_v49 }
 0x151   :  { %v114_v51 = vmul.f32 %v353_v47, %v82_v13 }
 0x152   :  { %v123_v52 = vmul.f32 %v313_v45, %v113_v48 }
 0x153   :  { %v355_v53 = vpop.eup %354  ;;  %v124_v57 = vmul.f32 %v313_v45, %v114_v51 }
 0x154   :  { %v133_v55 = vadd.f32 %v314_v50, %v123_v52  ;;  %v115_v56 = vmul.f32 %v355_v53, %v83_v21 }
 0x155   :  { %v134_v60 = vadd.f32 %v314_v50, %v124_v57 }
 0x156   :  { %v136_v58 = vpack.c.bf16 %v133_v55, %v132_v54  ;;  %v125_v59 = vmul.f32 %v313_v45, %v115_v56 }
 0x158   :  { %334 = vmatprep.mubr.msk.bf16.mxu0 %vm62_vm0, %v136_v58  ;;  %v135_v61 = vadd.f32 %v314_v50, %v125_v59 }
 0x15a   :  { %v137_v62 = vpack.c.bf16 %v135_v61, %v134_v60 }
 0x15c   :  { %335 = vmatmul.mubr.msk.bf16.vlgmr.msra.gmra.mxu0 %vm62_vm0, %v137_v62 }
 0x21c   :  { %v336_v63 = vpop.f32.mrf.mxu0 }
 0x21d   :  { %v218_v5 = vadd.f32 %v336_v63, %v315_v0 }
 0x21e   :  { %v209_v1 = vpop.f32.mrf.mxu0 }
 0x21f   :  { %v210_v2 = vadd.f32 %v315_v0, %v209_v1 }
 0x220   :  { %v337_v3 = vpop.f32.mrf.mxu0 }
 0x221   :  { %226 = vadd.xlane.f32.xlu0 %v210_v2  ;;  %v221_v7 = vadd.f32 %v337_v3, %v315_v0 }
 0x222   :  { %v212_v4 = vpop.f32.mrf.mxu0 }
 0x223   :  { %v213_v6 = vadd.f32 %v315_v0, %v212_v4 }
 0x225   :  { %228 = vadd.xlane.f32.xlu1 %v213_v6  ;;  %230 = vadd.xlane.f32.xlu0 %v218_v5 }
 0x229   :  { %232 = vadd.xlane.f32.xlu1 %v221_v7 }
 0x2aa   :  { %v227_v8 = vpop.xlane.xlu0 %226 }
 0x2ab   :  { %v235_v9 = vmul.f32 0.0078125, %v227_v8 }
 0x2ad   :  { %v239_v10 = vsub.f32 %v210_v2, %v235_v9 }
 0x2ae   :  { %v229_v11 = vpop.xlane.xlu1 %228  ;;  %v231_v12 = vpop.xlane.xlu0 %230 }
 0x2af   :  { %v236_v13 = vmul.f32 0.0078125, %v229_v11  ;;  %v237_v14 = vmul.f32 0.0078125, %v231_v12  ;;  %v243_v15 = vmul.f32 %v239_v10, %v239_v10 }
 0x2b1   :  { %v240_v16 = vsub.f32 %v213_v6, %v236_v13  ;;  %v241_v17 = vsub.f32 %v218_v5, %v237_v14  ;;  %247 = vadd.xlane.f32.xlu0 %v243_v15 }
 0x2b2   :  { %v233_v18 = vpop.xlane.xlu1 %232 }
 0x2b3   :  { %v238_v19 = vmul.f32 0.0078125, %v233_v18  ;;  %v244_v20 = vmul.f32 %v240_v16, %v240_v16  ;;  %v245_v21 = vmul.f32 %v241_v17, %v241_v17 }
 0x2b5   :  { %v242_v22 = vsub.f32 %v221_v7, %v238_v19  ;;  %249 = vadd.xlane.f32.xlu1 %v244_v20  ;;  %251 = vadd.xlane.f32.xlu0 %v245_v21 }
 0x2b7   :  { %v246_v23 = vmul.f32 %v242_v22, %v242_v22 }
 0x2b9   :  { %253 = vadd.xlane.f32.xlu1 %v246_v23 }
 0x33a   :  { %v248_v24 = vpop.xlane.xlu0 %247 }
 0x33b   :  { %v255_v25 = vmul.f32 0.0078125, %v248_v24 }
 0x33d   :  { %v259_v26 = vadd.f32 1e-05, %v255_v25 }
 0x33e   :  { %v250_v27 = vpop.xlane.xlu1 %249  ;;  %v252_v28 = vpop.xlane.xlu0 %251 }
 0x33f   :  { %356 = vrsqrt.f32 %v259_v26  ;;  %v256_v29 = vmul.f32 0.0078125, %v250_v27  ;;  %v257_v30 = vmul.f32 0.0078125, %v252_v28 }
 0x341   :  { %v260_v31 = vadd.f32 1e-05, %v256_v29  ;;  %v261_v32 = vadd.f32 1e-05, %v257_v30 }
 0x342   :  { %v254_v33 = vpop.xlane.xlu1 %253 }
 0x343   :  { %358 = vrsqrt.f32 %v260_v31  ;;  %v258_v34 = vmul.f32 0.0078125, %v254_v33 }
 0x344   :  { %360 = vrsqrt.f32 %v261_v32 }
 0x345   :  { %v262_v35 = vadd.f32 1e-05, %v258_v34 }
 0x347   :  { %362 = vrsqrt.f32 %v262_v35 }
 0x34c   :  { %v357_v36 = vpop.eup %356 }
 0x34d   :  { %v267_v38 = vmul.f32 %v357_v36, %v239_v10 }
 0x34f   :  { %v277_v40 = vmul.f32 %v321_v37, %v267_v38 }
 0x350   :  { %v359_v41 = vpop.eup %358 }
 0x351   :  { %v361_v42 = vpop.eup %360  ;;  %v268_v43 = vmul.f32 %v359_v41, %v240_v16  ;;  %v287_v44 = vadd.f32 %v322_v39, %v277_v40 }
 0x352   :  { %v269_v45 = vmul.f32 %v361_v42, %v241_v17 }
 0x353   :  { %v278_v46 = vmul.f32 %v321_v37, %v268_v43  ;;  %291 = vst [vmem:[#allocation7] sm:$0xff] %v287_v44 }
 0x354   :  { %v363_v47 = vpop.eup %362  ;;  %v279_v48 = vmul.f32 %v321_v37, %v269_v45 }
 0x355   :  { %v270_v49 = vmul.f32 %v363_v47, %v242_v22  ;;  %v288_v50 = vadd.f32 %v322_v39, %v278_v46 }
 0x356   :  { %v289_v51 = vadd.f32 %v322_v39, %v279_v48 }
 0x357   :  { %v280_v52 = vmul.f32 %v321_v37, %v270_v49  ;;  %292 = vst [vmem:[#allocation7 + $0x8] sm:$0xff] %v288_v50 }
 0x358   :  { %293 = vst [vmem:[#allocation7 + $0x10] sm:$0xff] %v289_v51 }
 0x359   :  { %v290_v53 = vadd.f32 %v322_v39, %v280_v52 }
 0x35b   :  { %294 = vst [vmem:[#allocation7 + $0x18] sm:$0xff] %v290_v53 }
 0x35c   :  { %415 = shalt.err (!%p412_p0)
}
 0x35d   :  { %306 = dma.vmem_to_hbm [thread:$0]  %s301_s5, 512, %s524_s7, [#allocation4], %s431_s27, %s431_s27, %s432_s28  }
 0x35e   :  { %428 = dma.done.wait [#allocation4], 512  }
 0x35f   :  { %429 = vsyncadd [#allocation4], 4294966784 }
 0x360   :  { %310 = vsyncpa [#allocation3], 1 }
 0x361   :  { %311 = vsyncpa [#allocation6], 1 }
 0x362   :  { %312 = vsyncpa [#allocation4], 1 }

</bundles_post_ra>
